<compile_context>
chip_gen: v7x
topology: tpu7x:2x2x1
jax: 0.10.0
libtpu: 0.0.40
codegen_flags: <defaults>
</compile_context>

<pallas_src>
import functools

import jax
import jax.numpy as jnp
from jax import lax
from jax.experimental import pallas as pl
from jax.experimental.pallas import tpu as pltpu

B_BLOCK = 8          # sentences per program (sublane-aligned M rows)
LANE = 128           # lane-dense tag padding


def _lstm_tagger_kernel(ids_ref, emb_ref, wih_ref, whh_ref, b_ref,
                        wout_ref, bout_ref, out_ref,
                        *, hidden_dim: int, seq_len: int, vocab: int):
    H = hidden_dim
    T = seq_len
    BB = B_BLOCK
    TB = T * BB

    # ---- Fused embedding gather: one-hot(ids) @ emb_table on the MXU. ----
    ids = ids_ref[0]                                           # (TB, 1) i32, time-major
    iota_v = lax.broadcasted_iota(jnp.int32, (TB, vocab), 1)   # (TB, V)
    one_hot = jnp.where(ids == iota_v, 1.0, 0.0)               # (TB, V) f32
    embeds = jnp.dot(one_hot, emb_ref[...],
                     preferred_element_type=jnp.float32)       # (TB, E)

    # ---- Hoisted input projection: one M=T*B matmul, bias fused. ----
    gates_x = (jnp.dot(embeds, wih_ref[...],
                       preferred_element_type=jnp.float32)
               + b_ref[...])                                   # (TB, 4H)

    whh = whh_ref[...]                                         # (H, 4H) resident

    h = jnp.zeros((BB, H), jnp.float32)
    c = jnp.zeros((BB, H), jnp.float32)
    h_list = []

    # ---- Statically unrolled recurrence (T is a compile-time constant). ----
    for t in range(T):
        gates = gates_x[t * BB:(t + 1) * BB, :] + jnp.dot(
            h, whh, preferred_element_type=jnp.float32)        # (BB, 4H)

        # Full-vreg nonlinearities (2 EUP pushes/step), then static lane slices.
        sig = jax.nn.sigmoid(gates)
        tnh = jnp.tanh(gates)
        i_g = sig[:, 0 * H:1 * H]
        f_g = sig[:, 1 * H:2 * H]
        g_g = tnh[:, 2 * H:3 * H]
        o_g = sig[:, 3 * H:4 * H]

        c = f_g * c + i_g * g_g
        h = o_g * jnp.tanh(c)
        h_list.append(h)                                       # stays in vregs

    hs = jnp.concatenate(h_list, axis=0)                       # (TB, H) time-major

    # ---- hidden2tag + log_softmax (tag axis padded lane-dense to 128). ----
    tag_space = (jnp.dot(hs, wout_ref[...],
                         preferred_element_type=jnp.float32)
                 + bout_ref[...])                              # (TB, 128); pads=-1e30
    m = jnp.max(tag_space, axis=1, keepdims=True)
    shifted = tag_space - m
    lse = jnp.log(jnp.sum(jnp.exp(shifted), axis=1, keepdims=True))
    out_ref[0] = shifted - lse


def prepare_params(emb_table, w_ih, w_hh, b_ih, b_hh, w_out, b_out):
    """One-time weight prep: transposes, bias fusion, lane-dense tag padding."""
    H = w_hh.shape[1]
    Tg = w_out.shape[0]
    tg_pad = max(LANE, ((Tg + LANE - 1) // LANE) * LANE)

    wih_t = jnp.transpose(w_ih)                                # (E, 4H)
    whh_t = jnp.transpose(w_hh)                                # (H, 4H)
    bias = (b_ih + b_hh).reshape(1, 4 * H)                     # (1, 4H)

    # Zero weight columns + very negative bias on padded tags so max/logsumexp
    # over the padded row are unaffected.
    wout_t = jnp.pad(jnp.transpose(w_out), ((0, 0), (0, tg_pad - Tg)))
    bout = jnp.pad(b_out, (0, tg_pad - Tg),
                   constant_values=-1e30).reshape(1, tg_pad)

    return (emb_table, wih_t, whh_t, bias, wout_t, bout)


def lstm_tagger_forward_batch(sentences, params, tagset_size):
    """Batched hot path: B equal-length sentences -> (B, T, tagset_size)."""
    emb_table, wih_t, whh_t, bias, wout_t, bout = params
    B, T = sentences.shape
    V, E = emb_table.shape
    H = whh_t.shape[0]
    tg_pad = wout_t.shape[1]

    G = pl.cdiv(B, B_BLOCK)
    B_pad = G * B_BLOCK
    if B_pad != B:
        sentences = jnp.pad(sentences, ((0, B_pad - B), (0, 0)))

    # Layout plumbing (wrapper glue): block-major, time-major flattened ids so
    # each program reads a contiguous (T*B_BLOCK, 1) column of token ids.
    ids_blocks = (sentences.reshape(G, B_BLOCK, T)
                  .transpose(0, 2, 1)
                  .reshape(G, T * B_BLOCK, 1)
                  .astype(jnp.int32))

    TB = T * B_BLOCK
    kernel = functools.partial(_lstm_tagger_kernel,
                               hidden_dim=H, seq_len=T, vocab=V)

    out = pl.pallas_call(
        kernel,
        out_shape=jax.ShapeDtypeStruct((G, TB, tg_pad), jnp.float32),
        grid=(G,),
        in_specs=[
            pl.BlockSpec((1, TB, 1), lambda g: (g, 0, 0)),      # ids (per block)
            pl.BlockSpec((V, E), lambda g: (0, 0)),             # emb_table
            pl.BlockSpec(wih_t.shape, lambda g: (0, 0)),        # W_ih^T
            pl.BlockSpec(whh_t.shape, lambda g: (0, 0)),        # W_hh^T
            pl.BlockSpec(bias.shape, lambda g: (0, 0)),         # fused bias
            pl.BlockSpec(wout_t.shape, lambda g: (0, 0)),       # W_out^T (padded)
            pl.BlockSpec(bout.shape, lambda g: (0, 0)),         # b_out (padded)
        ],
        out_specs=pl.BlockSpec((1, TB, tg_pad), lambda g: (g, 0, 0)),
        compiler_params=pltpu.CompilerParams(
            dimension_semantics=("parallel",),          # shards blocks on v7x TCs
            vmem_limit_bytes=32 * 1024 * 1024),
    )(ids_blocks, emb_table, wih_t, whh_t, bias, wout_t, bout)

    # (G, T*BB, P) time-major -> (B, T, tagset_size)
    out = (out.reshape(G, T, B_BLOCK, tg_pad)
              .transpose(0, 2, 1, 3)
              .reshape(B_pad, T, tg_pad))
    return out[:B, :, :tagset_size]


def lstm_tagger_forward(sentence, params, tagset_size):
    """Single-sentence forward matching LSTMTagger.forward (T,) -> (T, Tg)."""
    sentences = jnp.broadcast_to(sentence[None, :],
                                 (B_BLOCK, sentence.shape[0]))
    return lstm_tagger_forward_batch(sentences, params, tagset_size)[0]


def _reference_forward(sentence, emb_table, w_ih, w_hh, b_ih, b_hh,
                       w_out, b_out):
    """Pure-JAX reference mirroring torch.nn.LSTM semantics (batch=1)."""
    H = w_hh.shape[1]
    embeds = emb_table[sentence]

    def step(carry, x):
        h, c = carry
        gates = x @ w_ih.T + b_ih + h @ w_hh.T + b_hh
        i = jax.nn.sigmoid(gates[0 * H:1 * H])
        f = jax.nn.sigmoid(gates[1 * H:2 * H])
        g = jnp.tanh(gates[2 * H:3 * H])
        o = jax.nn.sigmoid(gates[3 * H:4 * H])
        c = f * c + i * g
        h = o * jnp.tanh(c)
        return (h, c), h

    (_, _), hs = lax.scan(step, (jnp.zeros(H), jnp.zeros(H)), embeds)
    tag_space = hs @ w_out.T + b_out
    return jax.nn.log_softmax(tag_space, axis=1)


if __name__ == "__main__":
    # Small, deterministic configuration.
    VOCAB, EMB, HID, TAGS, SEQ, BATCH = 20, 16, 32, 8, 8, 16

    key = jax.random.PRNGKey(0)
    ks = jax.random.split(key, 8)
    bound = 1.0 / jnp.sqrt(HID)

    emb_table = jax.random.normal(ks[0], (VOCAB, EMB), jnp.float32)
    w_ih = jax.random.uniform(ks[1], (4 * HID, EMB), jnp.float32, -bound, bound)
    w_hh = jax.random.uniform(ks[2], (4 * HID, HID), jnp.float32, -bound, bound)
    b_ih = jax.random.uniform(ks[3], (4 * HID,), jnp.float32, -bound, bound)
    b_hh = jax.random.uniform(ks[4], (4 * HID,), jnp.float32, -bound, bound)
    w_out = jax.random.uniform(ks[5], (TAGS, HID), jnp.float32, -bound, bound)
    b_out = jax.random.uniform(ks[6], (TAGS,), jnp.float32, -bound, bound)
    sentences = jax.random.randint(ks[7], (BATCH, SEQ), 0, VOCAB, jnp.int32)

    # One-time weight preparation.
    params = jax.tree.map(jax.block_until_ready,
                          prepare_params(emb_table, w_ih, w_hh, b_ih, b_hh,
                                         w_out, b_out))

    # Batched kernel (grid of 2 batch blocks -> exercises the parallel grid).
    out_b = lstm_tagger_forward_batch(sentences, params, TAGS)
    out_b = jax.block_until_ready(out_b)
    assert out_b.shape == (BATCH, SEQ, TAGS)

    refs = jax.vmap(_reference_forward,
                    in_axes=(0, None, None, None, None, None, None, None))(
        sentences, emb_table, w_ih, w_hh, b_ih, b_hh, w_out, b_out)
    assert jnp.allclose(out_b, refs, atol=1e-4, rtol=1e-4), "batched mismatch"

    # Single-sentence forward (module-faithful signature).
    out_1 = lstm_tagger_forward(sentences[0], params, TAGS)
    out_1 = jax.block_until_ready(out_1)
    assert out_1.shape == (SEQ, TAGS)
    assert jnp.allclose(out_1, refs[0], atol=1e-4, rtol=1e-4), "single mismatch"

    print("KERNEL_OK")
</pallas_src>

<mosaic_0001>
module attributes {stable_mosaic.version = 11 : i64} {
  func.func @_lstm_tagger_kernel(%arg0: i32, %arg1: memref<1x64x1xi32, #tpu.memory_space<vmem>>, %arg2: memref<20x16xf32, #tpu.memory_space<vmem>>, %arg3: memref<16x128xf32, #tpu.memory_space<vmem>>, %arg4: memref<32x128xf32, #tpu.memory_space<vmem>>, %arg5: memref<1x128xf32, #tpu.memory_space<vmem>>, %arg6: memref<32x128xf32, #tpu.memory_space<vmem>>, %arg7: memref<1x128xf32, #tpu.memory_space<vmem>>, %arg8: memref<1x64x128xf32, #tpu.memory_space<vmem>>) attributes {dimension_semantics = [#tpu.dimension_semantics<parallel>], iteration_bounds = array<i64: 2>, scalar_prefetch = 0 : i64, scratch_operands = 0 : i64, tpu.core_type = #tpu.core_type<tc>, window_params = [{transform_indices = @transform_0, window_bounds = array<i64: 1, 64, 1>}, {pipeline_mode = #tpu.pipeline_mode<synchronous>, transform_indices = @transform_1, window_bounds = array<i64: 20, 16>}, {pipeline_mode = #tpu.pipeline_mode<synchronous>, transform_indices = @transform_2, window_bounds = array<i64: 16, 128>}, {pipeline_mode = #tpu.pipeline_mode<synchronous>, transform_indices = @transform_3, window_bounds = array<i64: 32, 128>}, {pipeline_mode = #tpu.pipeline_mode<synchronous>, transform_indices = @transform_4, window_bounds = array<i64: 1, 128>}, {pipeline_mode = #tpu.pipeline_mode<synchronous>, transform_indices = @transform_5, window_bounds = array<i64: 32, 128>}, {pipeline_mode = #tpu.pipeline_mode<synchronous>, transform_indices = @transform_6, window_bounds = array<i64: 1, 128>}, {transform_indices = @transform_7, window_bounds = array<i64: 1, 64, 128>}]} {
    %c0 = arith.constant 0 : index
    %c0_0 = arith.constant 0 : index
    %c0_1 = arith.constant 0 : index
    %0 = vector.load %arg1[%c0, %c0_0, %c0_1] : memref<1x64x1xi32, #tpu.memory_space<vmem>>, vector<1x64x1xi32>
    %1 = vector.shape_cast %0 : vector<1x64x1xi32> to vector<64x1xi32>
    %2 = tpu.iota {dimensions = array<i32: 1>} : vector<64x20xi32>
    %3 = vector.broadcast %1 : vector<64x1xi32> to vector<64x20xi32>
    %4 = arith.cmpi eq, %3, %2 : vector<64x20xi32>
    %cst = arith.constant 1.000000e+00 : f32
    %cst_2 = arith.constant 0.000000e+00 : f32
    %5 = vector.broadcast %cst : f32 to vector<64x20xf32>
    %6 = vector.broadcast %cst_2 : f32 to vector<64x20xf32>
    %7 = arith.select %4, %5, %6 : vector<64x20xi1>, vector<64x20xf32>
    %c0_3 = arith.constant 0 : index
    %c0_4 = arith.constant 0 : index
    %8 = vector.load %arg2[%c0_3, %c0_4] : memref<20x16xf32, #tpu.memory_space<vmem>>, vector<20x16xf32>
    %cst_5 = arith.constant dense<0.000000e+00> : vector<64x16xf32>
    %9 = tpu.matmul %7, %8, %cst_5 {dimension_numbers = #tpu.dot_dimension_numbers<[1], [0], [0], [1], [0, 0, 1, 1], [], []>} : vector<64x20xf32>, vector<20x16xf32>, vector<64x16xf32> -> vector<64x16xf32>
    %c0_6 = arith.constant 0 : index
    %c0_7 = arith.constant 0 : index
    %10 = vector.load %arg3[%c0_6, %c0_7] : memref<16x128xf32, #tpu.memory_space<vmem>>, vector<16x128xf32>
    %cst_8 = arith.constant dense<0.000000e+00> : vector<64x128xf32>
    %11 = tpu.matmul %9, %10, %cst_8 {dimension_numbers = #tpu.dot_dimension_numbers<[1], [0], [0], [1], [0, 0, 1, 1], [], []>} : vector<64x16xf32>, vector<16x128xf32>, vector<64x128xf32> -> vector<64x128xf32>
    %c0_9 = arith.constant 0 : index
    %c0_10 = arith.constant 0 : index
    %12 = vector.load %arg5[%c0_9, %c0_10] : memref<1x128xf32, #tpu.memory_space<vmem>>, vector<1x128xf32>
    %13 = vector.broadcast %12 : vector<1x128xf32> to vector<64x128xf32>
    %14 = arith.addf %11, %13 : vector<64x128xf32>
    %c0_11 = arith.constant 0 : index
    %c0_12 = arith.constant 0 : index
    %15 = vector.load %arg4[%c0_11, %c0_12] : memref<32x128xf32, #tpu.memory_space<vmem>>, vector<32x128xf32>
    %cst_13 = arith.constant 0.000000e+00 : f32
    %16 = vector.broadcast %cst_13 : f32 to vector<8x32xf32>
    %cst_14 = arith.constant 0.000000e+00 : f32
    %17 = vector.broadcast %cst_14 : f32 to vector<8x32xf32>
    %18 = vector.extract_strided_slice %14 {offsets = [0, 0], sizes = [8, 128], strides = [1, 1]} : vector<64x128xf32> to vector<8x128xf32>
    %cst_15 = arith.constant dense<0.000000e+00> : vector<8x128xf32>
    %19 = tpu.matmul %16, %15, %cst_15 {dimension_numbers = #tpu.dot_dimension_numbers<[1], [0], [0], [1], [0, 0, 1, 1], [], []>} : vector<8x32xf32>, vector<32x128xf32>, vector<8x128xf32> -> vector<8x128xf32>
    %20 = arith.addf %18, %19 : vector<8x128xf32>
    %21 = arith.negf %20 : vector<8x128xf32>
    %22 = math.exp %21 : vector<8x128xf32>
    %cst_16 = arith.constant 1.000000e+00 : f32
    %23 = vector.broadcast %cst_16 : f32 to vector<8x128xf32>
    %24 = arith.addf %23, %22 : vector<8x128xf32>
    %25 = arith.divf %23, %24 : vector<8x128xf32>
    %26 = math.tanh %20 : vector<8x128xf32>
    %27 = vector.extract_strided_slice %25 {offsets = [0, 0], sizes = [8, 32], strides = [1, 1]} : vector<8x128xf32> to vector<8x32xf32>
    %28 = vector.extract_strided_slice %25 {offsets = [0, 32], sizes = [8, 32], strides = [1, 1]} : vector<8x128xf32> to vector<8x32xf32>
    %29 = vector.extract_strided_slice %26 {offsets = [0, 64], sizes = [8, 32], strides = [1, 1]} : vector<8x128xf32> to vector<8x32xf32>
    %30 = vector.extract_strided_slice %25 {offsets = [0, 96], sizes = [8, 32], strides = [1, 1]} : vector<8x128xf32> to vector<8x32xf32>
    %31 = arith.mulf %28, %17 : vector<8x32xf32>
    %32 = arith.mulf %27, %29 : vector<8x32xf32>
    %33 = arith.addf %31, %32 : vector<8x32xf32>
    %34 = math.tanh %33 : vector<8x32xf32>
    %35 = arith.mulf %30, %34 : vector<8x32xf32>
    %36 = vector.extract_strided_slice %14 {offsets = [8, 0], sizes = [8, 128], strides = [1, 1]} : vector<64x128xf32> to vector<8x128xf32>
    %cst_17 = arith.constant dense<0.000000e+00> : vector<8x128xf32>
    %37 = tpu.matmul %35, %15, %cst_17 {dimension_numbers = #tpu.dot_dimension_numbers<[1], [0], [0], [1], [0, 0, 1, 1], [], []>} : vector<8x32xf32>, vector<32x128xf32>, vector<8x128xf32> -> vector<8x128xf32>
    %38 = arith.addf %36, %37 : vector<8x128xf32>
    %39 = arith.negf %38 : vector<8x128xf32>
    %40 = math.exp %39 : vector<8x128xf32>
    %cst_18 = arith.constant 1.000000e+00 : f32
    %41 = vector.broadcast %cst_18 : f32 to vector<8x128xf32>
    %42 = arith.addf %41, %40 : vector<8x128xf32>
    %43 = arith.divf %41, %42 : vector<8x128xf32>
    %44 = math.tanh %38 : vector<8x128xf32>
    %45 = vector.extract_strided_slice %43 {offsets = [0, 0], sizes = [8, 32], strides = [1, 1]} : vector<8x128xf32> to vector<8x32xf32>
    %46 = vector.extract_strided_slice %43 {offsets = [0, 32], sizes = [8, 32], strides = [1, 1]} : vector<8x128xf32> to vector<8x32xf32>
    %47 = vector.extract_strided_slice %44 {offsets = [0, 64], sizes = [8, 32], strides = [1, 1]} : vector<8x128xf32> to vector<8x32xf32>
    %48 = vector.extract_strided_slice %43 {offsets = [0, 96], sizes = [8, 32], strides = [1, 1]} : vector<8x128xf32> to vector<8x32xf32>
    %49 = arith.mulf %46, %33 : vector<8x32xf32>
    %50 = arith.mulf %45, %47 : vector<8x32xf32>
    %51 = arith.addf %49, %50 : vector<8x32xf32>
    %52 = math.tanh %51 : vector<8x32xf32>
    %53 = arith.mulf %48, %52 : vector<8x32xf32>
    %54 = vector.extract_strided_slice %14 {offsets = [16, 0], sizes = [8, 128], strides = [1, 1]} : vector<64x128xf32> to vector<8x128xf32>
    %cst_19 = arith.constant dense<0.000000e+00> : vector<8x128xf32>
    %55 = tpu.matmul %53, %15, %cst_19 {dimension_numbers = #tpu.dot_dimension_numbers<[1], [0], [0], [1], [0, 0, 1, 1], [], []>} : vector<8x32xf32>, vector<32x128xf32>, vector<8x128xf32> -> vector<8x128xf32>
    %56 = arith.addf %54, %55 : vector<8x128xf32>
    %57 = arith.negf %56 : vector<8x128xf32>
    %58 = math.exp %57 : vector<8x128xf32>
    %cst_20 = arith.constant 1.000000e+00 : f32
    %59 = vector.broadcast %cst_20 : f32 to vector<8x128xf32>
    %60 = arith.addf %59, %58 : vector<8x128xf32>
    %61 = arith.divf %59, %60 : vector<8x128xf32>
    %62 = math.tanh %56 : vector<8x128xf32>
    %63 = vector.extract_strided_slice %61 {offsets = [0, 0], sizes = [8, 32], strides = [1, 1]} : vector<8x128xf32> to vector<8x32xf32>
    %64 = vector.extract_strided_slice %61 {offsets = [0, 32], sizes = [8, 32], strides = [1, 1]} : vector<8x128xf32> to vector<8x32xf32>
    %65 = vector.extract_strided_slice %62 {offsets = [0, 64], sizes = [8, 32], strides = [1, 1]} : vector<8x128xf32> to vector<8x32xf32>
    %66 = vector.extract_strided_slice %61 {offsets = [0, 96], sizes = [8, 32], strides = [1, 1]} : vector<8x128xf32> to vector<8x32xf32>
    %67 = arith.mulf %64, %51 : vector<8x32xf32>
    %68 = arith.mulf %63, %65 : vector<8x32xf32>
    %69 = arith.addf %67, %68 : vector<8x32xf32>
    %70 = math.tanh %69 : vector<8x32xf32>
    %71 = arith.mulf %66, %70 : vector<8x32xf32>
    %72 = vector.extract_strided_slice %14 {offsets = [24, 0], sizes = [8, 128], strides = [1, 1]} : vector<64x128xf32> to vector<8x128xf32>
    %cst_21 = arith.constant dense<0.000000e+00> : vector<8x128xf32>
    %73 = tpu.matmul %71, %15, %cst_21 {dimension_numbers = #tpu.dot_dimension_numbers<[1], [0], [0], [1], [0, 0, 1, 1], [], []>} : vector<8x32xf32>, vector<32x128xf32>, vector<8x128xf32> -> vector<8x128xf32>
    %74 = arith.addf %72, %73 : vector<8x128xf32>
    %75 = arith.negf %74 : vector<8x128xf32>
    %76 = math.exp %75 : vector<8x128xf32>
    %cst_22 = arith.constant 1.000000e+00 : f32
    %77 = vector.broadcast %cst_22 : f32 to vector<8x128xf32>
    %78 = arith.addf %77, %76 : vector<8x128xf32>
    %79 = arith.divf %77, %78 : vector<8x128xf32>
    %80 = math.tanh %74 : vector<8x128xf32>
    %81 = vector.extract_strided_slice %79 {offsets = [0, 0], sizes = [8, 32], strides = [1, 1]} : vector<8x128xf32> to vector<8x32xf32>
    %82 = vector.extract_strided_slice %79 {offsets = [0, 32], sizes = [8, 32], strides = [1, 1]} : vector<8x128xf32> to vector<8x32xf32>
    %83 = vector.extract_strided_slice %80 {offsets = [0, 64], sizes = [8, 32], strides = [1, 1]} : vector<8x128xf32> to vector<8x32xf32>
    %84 = vector.extract_strided_slice %79 {offsets = [0, 96], sizes = [8, 32], strides = [1, 1]} : vector<8x128xf32> to vector<8x32xf32>
    %85 = arith.mulf %82, %69 : vector<8x32xf32>
    %86 = arith.mulf %81, %83 : vector<8x32xf32>
    %87 = arith.addf %85, %86 : vector<8x32xf32>
    %88 = math.tanh %87 : vector<8x32xf32>
    %89 = arith.mulf %84, %88 : vector<8x32xf32>
    %90 = vector.extract_strided_slice %14 {offsets = [32, 0], sizes = [8, 128], strides = [1, 1]} : vector<64x128xf32> to vector<8x128xf32>
    %cst_23 = arith.constant dense<0.000000e+00> : vector<8x128xf32>
    %91 = tpu.matmul %89, %15, %cst_23 {dimension_numbers = #tpu.dot_dimension_numbers<[1], [0], [0], [1], [0, 0, 1, 1], [], []>} : vector<8x32xf32>, vector<32x128xf32>, vector<8x128xf32> -> vector<8x128xf32>
    %92 = arith.addf %90, %91 : vector<8x128xf32>
    %93 = arith.negf %92 : vector<8x128xf32>
    %94 = math.exp %93 : vector<8x128xf32>
    %cst_24 = arith.constant 1.000000e+00 : f32
    %95 = vector.broadcast %cst_24 : f32 to vector<8x128xf32>
    %96 = arith.addf %95, %94 : vector<8x128xf32>
    %97 = arith.divf %95, %96 : vector<8x128xf32>
    %98 = math.tanh %92 : vector<8x128xf32>
    %99 = vector.extract_strided_slice %97 {offsets = [0, 0], sizes = [8, 32], strides = [1, 1]} : vector<8x128xf32> to vector<8x32xf32>
    %100 = vector.extract_strided_slice %97 {offsets = [0, 32], sizes = [8, 32], strides = [1, 1]} : vector<8x128xf32> to vector<8x32xf32>
    %101 = vector.extract_strided_slice %98 {offsets = [0, 64], sizes = [8, 32], strides = [1, 1]} : vector<8x128xf32> to vector<8x32xf32>
    %102 = vector.extract_strided_slice %97 {offsets = [0, 96], sizes = [8, 32], strides = [1, 1]} : vector<8x128xf32> to vector<8x32xf32>
    %103 = arith.mulf %100, %87 : vector<8x32xf32>
    %104 = arith.mulf %99, %101 : vector<8x32xf32>
    %105 = arith.addf %103, %104 : vector<8x32xf32>
    %106 = math.tanh %105 : vector<8x32xf32>
    %107 = arith.mulf %102, %106 : vector<8x32xf32>
    %108 = vector.extract_strided_slice %14 {offsets = [40, 0], sizes = [8, 128], strides = [1, 1]} : vector<64x128xf32> to vector<8x128xf32>
    %cst_25 = arith.constant dense<0.000000e+00> : vector<8x128xf32>
    %109 = tpu.matmul %107, %15, %cst_25 {dimension_numbers = #tpu.dot_dimension_numbers<[1], [0], [0], [1], [0, 0, 1, 1], [], []>} : vector<8x32xf32>, vector<32x128xf32>, vector<8x128xf32> -> vector<8x128xf32>
    %110 = arith.addf %108, %109 : vector<8x128xf32>
    %111 = arith.negf %110 : vector<8x128xf32>
    %112 = math.exp %111 : vector<8x128xf32>
    %cst_26 = arith.constant 1.000000e+00 : f32
    %113 = vector.broadcast %cst_26 : f32 to vector<8x128xf32>
    %114 = arith.addf %113, %112 : vector<8x128xf32>
    %115 = arith.divf %113, %114 : vector<8x128xf32>
    %116 = math.tanh %110 : vector<8x128xf32>
    %117 = vector.extract_strided_slice %115 {offsets = [0, 0], sizes = [8, 32], strides = [1, 1]} : vector<8x128xf32> to vector<8x32xf32>
    %118 = vector.extract_strided_slice %115 {offsets = [0, 32], sizes = [8, 32], strides = [1, 1]} : vector<8x128xf32> to vector<8x32xf32>
    %119 = vector.extract_strided_slice %116 {offsets = [0, 64], sizes = [8, 32], strides = [1, 1]} : vector<8x128xf32> to vector<8x32xf32>
    %120 = vector.extract_strided_slice %115 {offsets = [0, 96], sizes = [8, 32], strides = [1, 1]} : vector<8x128xf32> to vector<8x32xf32>
    %121 = arith.mulf %118, %105 : vector<8x32xf32>
    %122 = arith.mulf %117, %119 : vector<8x32xf32>
    %123 = arith.addf %121, %122 : vector<8x32xf32>
    %124 = math.tanh %123 : vector<8x32xf32>
    %125 = arith.mulf %120, %124 : vector<8x32xf32>
    %126 = vector.extract_strided_slice %14 {offsets = [48, 0], sizes = [8, 128], strides = [1, 1]} : vector<64x128xf32> to vector<8x128xf32>
    %cst_27 = arith.constant dense<0.000000e+00> : vector<8x128xf32>
    %127 = tpu.matmul %125, %15, %cst_27 {dimension_numbers = #tpu.dot_dimension_numbers<[1], [0], [0], [1], [0, 0, 1, 1], [], []>} : vector<8x32xf32>, vector<32x128xf32>, vector<8x128xf32> -> vector<8x128xf32>
    %128 = arith.addf %126, %127 : vector<8x128xf32>
    %129 = arith.negf %128 : vector<8x128xf32>
    %130 = math.exp %129 : vector<8x128xf32>
    %cst_28 = arith.constant 1.000000e+00 : f32
    %131 = vector.broadcast %cst_28 : f32 to vector<8x128xf32>
    %132 = arith.addf %131, %130 : vector<8x128xf32>
    %133 = arith.divf %131, %132 : vector<8x128xf32>
    %134 = math.tanh %128 : vector<8x128xf32>
    %135 = vector.extract_strided_slice %133 {offsets = [0, 0], sizes = [8, 32], strides = [1, 1]} : vector<8x128xf32> to vector<8x32xf32>
    %136 = vector.extract_strided_slice %133 {offsets = [0, 32], sizes = [8, 32], strides = [1, 1]} : vector<8x128xf32> to vector<8x32xf32>
    %137 = vector.extract_strided_slice %134 {offsets = [0, 64], sizes = [8, 32], strides = [1, 1]} : vector<8x128xf32> to vector<8x32xf32>
    %138 = vector.extract_strided_slice %133 {offsets = [0, 96], sizes = [8, 32], strides = [1, 1]} : vector<8x128xf32> to vector<8x32xf32>
    %139 = arith.mulf %136, %123 : vector<8x32xf32>
    %140 = arith.mulf %135, %137 : vector<8x32xf32>
    %141 = arith.addf %139, %140 : vector<8x32xf32>
    %142 = math.tanh %141 : vector<8x32xf32>
    %143 = arith.mulf %138, %142 : vector<8x32xf32>
    %144 = vector.extract_strided_slice %14 {offsets = [56, 0], sizes = [8, 128], strides = [1, 1]} : vector<64x128xf32> to vector<8x128xf32>
    %cst_29 = arith.constant dense<0.000000e+00> : vector<8x128xf32>
    %145 = tpu.matmul %143, %15, %cst_29 {dimension_numbers = #tpu.dot_dimension_numbers<[1], [0], [0], [1], [0, 0, 1, 1], [], []>} : vector<8x32xf32>, vector<32x128xf32>, vector<8x128xf32> -> vector<8x128xf32>
    %146 = arith.addf %144, %145 : vector<8x128xf32>
    %147 = arith.negf %146 : vector<8x128xf32>
    %148 = math.exp %147 : vector<8x128xf32>
    %cst_30 = arith.constant 1.000000e+00 : f32
    %149 = vector.broadcast %cst_30 : f32 to vector<8x128xf32>
    %150 = arith.addf %149, %148 : vector<8x128xf32>
    %151 = arith.divf %149, %150 : vector<8x128xf32>
    %152 = math.tanh %146 : vector<8x128xf32>
    %153 = vector.extract_strided_slice %151 {offsets = [0, 0], sizes = [8, 32], strides = [1, 1]} : vector<8x128xf32> to vector<8x32xf32>
    %154 = vector.extract_strided_slice %151 {offsets = [0, 32], sizes = [8, 32], strides = [1, 1]} : vector<8x128xf32> to vector<8x32xf32>
    %155 = vector.extract_strided_slice %152 {offsets = [0, 64], sizes = [8, 32], strides = [1, 1]} : vector<8x128xf32> to vector<8x32xf32>
    %156 = vector.extract_strided_slice %151 {offsets = [0, 96], sizes = [8, 32], strides = [1, 1]} : vector<8x128xf32> to vector<8x32xf32>
    %157 = arith.mulf %154, %141 : vector<8x32xf32>
    %158 = arith.mulf %153, %155 : vector<8x32xf32>
    %159 = arith.addf %157, %158 : vector<8x32xf32>
    %160 = math.tanh %159 : vector<8x32xf32>
    %161 = arith.mulf %156, %160 : vector<8x32xf32>
    %162 = tpu.concatenate %35, %53, %71, %89, %107, %125, %143, %161 in 0 : vector<8x32xf32>, vector<8x32xf32>, vector<8x32xf32>, vector<8x32xf32>, vector<8x32xf32>, vector<8x32xf32>, vector<8x32xf32>, vector<8x32xf32> -> vector<64x32xf32>
    %c0_31 = arith.constant 0 : index
    %c0_32 = arith.constant 0 : index
    %163 = vector.load %arg6[%c0_31, %c0_32] : memref<32x128xf32, #tpu.memory_space<vmem>>, vector<32x128xf32>
    %cst_33 = arith.constant dense<0.000000e+00> : vector<64x128xf32>
    %164 = tpu.matmul %162, %163, %cst_33 {dimension_numbers = #tpu.dot_dimension_numbers<[1], [0], [0], [1], [0, 0, 1, 1], [], []>} : vector<64x32xf32>, vector<32x128xf32>, vector<64x128xf32> -> vector<64x128xf32>
    %c0_34 = arith.constant 0 : index
    %c0_35 = arith.constant 0 : index
    %165 = vector.load %arg7[%c0_34, %c0_35] : memref<1x128xf32, #tpu.memory_space<vmem>>, vector<1x128xf32>
    %166 = vector.broadcast %165 : vector<1x128xf32> to vector<64x128xf32>
    %167 = arith.addf %164, %166 : vector<64x128xf32>
    %cst_36 = arith.constant dense<0xFF800000> : vector<64xf32>
    %168 = vector.multi_reduction <maximumf>, %167, %cst_36 [1] : vector<64x128xf32> to vector<64xf32>
    %169 = vector.shape_cast %168 : vector<64xf32> to vector<64x1xf32>
    %170 = vector.broadcast %169 : vector<64x1xf32> to vector<64x128xf32>
    %171 = arith.subf %167, %170 : vector<64x128xf32>
    %172 = math.exp %171 : vector<64x128xf32>
    %cst_37 = arith.constant dense<0.000000e+00> : vector<64xf32>
    %173 = vector.multi_reduction <add>, %172, %cst_37 [1] : vector<64x128xf32> to vector<64xf32>
    %174 = vector.shape_cast %173 : vector<64xf32> to vector<64x1xf32>
    %175 = math.log %174 : vector<64x1xf32>
    %176 = vector.broadcast %175 : vector<64x1xf32> to vector<64x128xf32>
    %177 = arith.subf %171, %176 : vector<64x128xf32>
    %c0_38 = arith.constant 0 : index
    %c0_39 = arith.constant 0 : index
    %c0_40 = arith.constant 0 : index
    %178 = vector.load %arg8[%c0_38, %c0_39, %c0_40] : memref<1x64x128xf32, #tpu.memory_space<vmem>>, vector<1x64x128xf32>
    %179 = vector.shape_cast %178 : vector<1x64x128xf32> to vector<64x128xf32>
    %180 = vector.shape_cast %177 : vector<64x128xf32> to vector<1x64x128xf32>
    tpu.vector_store %arg8[%c0_38, %c0_39, %c0_40], %180 {strides = array<i32>} : memref<1x64x128xf32, #tpu.memory_space<vmem>>, vector<1x64x128xf32>,
    return
  }
  func.func @transform_0(%arg0: i32) -> (i32, i32, i32) {
    %c0_i32 = arith.constant 0 : i32
    %c0_i32_0 = arith.constant 0 : i32
    %c0_i32_1 = arith.constant 0 : i32
    return %arg0, %c0_i32, %c0_i32_0 : i32, i32, i32
  }
  func.func @transform_1(%arg0: i32) -> (i32, i32) {
    %c0_i32 = arith.constant 0 : i32
    %c0_i32_0 = arith.constant 0 : i32
    %c0_i32_1 = arith.constant 0 : i32
    return %c0_i32, %c0_i32_0 : i32, i32
  }
  func.func @transform_2(%arg0: i32) -> (i32, i32) {
    %c0_i32 = arith.constant 0 : i32
    %c0_i32_0 = arith.constant 0 : i32
    %c0_i32_1 = arith.constant 0 : i32
    return %c0_i32, %c0_i32_0 : i32, i32
  }
  func.func @transform_3(%arg0: i32) -> (i32, i32) {
    %c0_i32 = arith.constant 0 : i32
    %c0_i32_0 = arith.constant 0 : i32
    %c0_i32_1 = arith.constant 0 : i32
    return %c0_i32, %c0_i32_0 : i32, i32
  }
  func.func @transform_4(%arg0: i32) -> (i32, i32) {
    %c0_i32 = arith.constant 0 : i32
    %c0_i32_0 = arith.constant 0 : i32
    %c0_i32_1 = arith.constant 0 : i32
    return %c0_i32, %c0_i32_0 : i32, i32
  }
  func.func @transform_5(%arg0: i32) -> (i32, i32) {
    %c0_i32 = arith.constant 0 : i32
    %c0_i32_0 = arith.constant 0 : i32
    %c0_i32_1 = arith.constant 0 : i32
    return %c0_i32, %c0_i32_0 : i32, i32
  }
  func.func @transform_6(%arg0: i32) -> (i32, i32) {
    %c0_i32 = arith.constant 0 : i32
    %c0_i32_0 = arith.constant 0 : i32
    %c0_i32_1 = arith.constant 0 : i32
    return %c0_i32, %c0_i32_0 : i32, i32
  }
  func.func @transform_7(%arg0: i32) -> (i32, i32, i32) {
    %c0_i32 = arith.constant 0 : i32
    %c0_i32_0 = arith.constant 0 : i32
    %c0_i32_1 = arith.constant 0 : i32
    return %arg0, %c0_i32, %c0_i32_0 : i32, i32, i32
  }
}

</mosaic_0001>

<bundles_post_ra>
// kernel: tpu_custom_call.1
= control target key start
LH: loop header
LB: loop body
LE: loop exit
PB: predicated region body
PF: predicated region fallthrough
CT: control target
= control target key end

     0   :  { %12 = vsyncpa [#allocation3], 0  ;;  %s2628_s0 = inlined_call_operand.vmem [shape: s32[2,64,1], index: 0, kind: input, shape index: {}]   ;;  %s2629_s1 = inlined_call_operand.vmem [shape: f32[20,16], index: 1, kind: input, shape index: {}]   ;;  %s2630_s2 = inlined_call_operand.vmem [shape: f32[16,128], index: 2, kind: input, shape index: {}]   ;;  %s2631_s3 = inlined_call_operand.vmem [shape: f32[32,128], index: 3, kind: input, shape index: {}]   ;;  %s2632_s4 = inlined_call_operand.vmem [shape: f32[1,128], index: 4, kind: input, shape index: {}]   ;;  %s2633_s5 = inlined_call_operand.vmem [shape: f32[32,128], index: 5, kind: input, shape index: {}]   ;;  %s2634_s6 = inlined_call_operand.vmem [shape: f32[1,128], index: 6, kind: input, shape index: {}]   ;;  %s2635_s7 = inlined_call_operand.hbm [shape: f32[2,64,128], index: 7, kind: output, shape index: {}]  }
   0x1   :  { %14 = vsyncpa [#allocation3 + $0x1], 0  ;;  %s2286_s24 = smov 0   ;;  %s2288_s25 = smov 0  }
   0x2   :  { %s2290_s26 = smov 0   ;;  %s2292_s27 = smov 0  }
   0x3 LB: > { %s2307_s28 = sadd.s32 4294967295, %s2235_s27   ;;  %s1691_s29 = sadd.s32 4294967294, %s2235_s27   ;;  %s2235_s27 = sphi %s2292_s27, %s2641_s27   ;;  %s2231_s26 = sphi %s2290_s26, %s2640_s26   ;;  %s2227_s25 = sphi %s2288_s25, %s2639_s25   ;;  %s2223_s24 = sphi %s2286_s24, %s2638_s24  }
   0x4   : > { %s2311_s30 = sadd.s32 1, %s2235_s27   ;;  %s179_s8 = sadd.s32 1, %s2231_s26 }
   0x5   : > { %s176_s9 = ssub.s32 %s2235_s27, %s2311_s30  ;;  %p189_p0 = scmp.ne.s32.totalorder %s2231_s26, %s2227_s25 }
   0x6   : > { %p177_p1 = scmp.eq.s32.totalorder %s176_s9, 0  ;;  %p190_p2 = scmp.eq.s32.totalorder %s2307_s28, 1 }
   0x7   : > { %p195_p3 = scmp.ne.s32.totalorder %s2227_s25, %s2223_s24  ;;  %p196_p4 = scmp.eq.s32.totalorder %s1691_s29, 1 }
   0x8   : > { %s2322_s10 = scalar_select %p177_p1, %s2231_s26, %s179_s8  }
   0x9   : > { %p2324_p5 = por %p190_p2, %p189_p0  ;;  %p2328_p6 = por %p196_p4, %p195_p3 }
   0xa   : > { %p1694_p7 = scmp.ge.s32.totalorder %s2235_s27, 1  ;;  %p240_p8 = scmp.lt.s32.totalorder %s2235_s27, 3 }
   0xc   : > { %p241_p9 = pnand %p1694_p7, %p240_p8 }
   0xd   : > { %p272_p10 = scmp.lt.s32.totalorder (!%p241_p9), %s2307_s28, 1  ;;  %v2237_v0 = vmov (!%p241_p9), 0   ;;  %v327_v1 = vld [vmem:[%s2629_s1] sm:$0xff] (!%p241_p9)  ;;  %v328_v2 = vld [vmem:[%s2629_s1 + $0x8] sm:$0xff] (!%p241_p9)  ;;  %v329_v8 = vld [vmem:[%s2629_s1 + $0x10] sm:$0xf] (!%p241_p9)  ;;  %v285_v16 = vlaneseq (!%p241_p9) }
   0xe   : > { %244 = sbr.rel (%p241_p9) target bundleno = 6550 (0x1996), region = 48  ;;  %2076 = vset.pattern.permute.xlu1 (!%p241_p9), %v2237_v0  ;;  %2075 = vset.pattern.permute.xlu0 (!%p241_p9), %v2237_v0  ;;  %v1962_v3 = vpack.c.bf16 (!%p241_p9), %v328_v2, %v327_v1  ;;  %vm355_vm0 = vcmask (!%p241_p9), 1043456   ;;  %v464_v13 = vld [vmem:[%s2630_s2] sm:$0xff] (!%p241_p9)  ;;  %v465_v14 = vld [vmem:[%s2630_s2 + $0x8] sm:$0xff] (!%p241_p9)  ;;  %vm330_vm1 = vcmask (!%p241_p9), 162816   ;;  %v2238_v20 = vmov (!%p241_p9), 0.0  }
   0xf   : > { %v1966_v15 = vpack.c.bf16 (!%p241_p9), %v465_v14, %v464_v13  ;;  %v286_v17 = vand.u32 (!%p241_p9), 127, %v285_v16  ;;  %v2239_v35 = vmov (!%p241_p9), 0.0|0.0   ;;  %vm473_vm10 = vcmask (!%p241_p9), 130048   ;;  %v603_v36 = vld [vmem:[%s2631_s3] sm:$0xff] (!%p241_p9)  ;;  %v604_v37 = vld [vmem:[%s2631_s3 + $0x8] sm:$0xff] (!%p241_p9)  ;;  %v605_v41 = vld [vmem:[%s2631_s3 + $0x10] sm:$0xff] (!%p241_p9) }
  0x10   : > { %1963 = vmatprep.subr.bf16.mxu0 (!%p241_p9), %v1962_v3  ;;  %v2379_v40 = vpack.c.bf16 (!%p241_p9), %v604_v37, %v603_v36  ;;  %v606_v42 = vld [vmem:[%s2631_s3 + $0x18] sm:$0xff] (!%p241_p9)  ;;  %vm2240_vm11 = vmmov (!%p241_p9), 0   ;;  %v1707_v50 = vld [vmem:[%s2632_s4] ss:$0 sm:$0xff] (!%p241_p9)  ;;  %s2241_s29 = smov (!%p241_p9), 64   ;;  %s2242_s8 = smov (!%p241_p9), 32  }
  0x11   : > { %1965 = vmatpush3.bf16.msra.mxu0 (!%p241_p9), %v1962_v3  ;;  %2026 = vmatprep.subr.bf16.mxu1 (!%p241_p9), %v1966_v15  ;;  %v2391_v45 = vpack.c.bf16 (!%p241_p9), %v606_v42, %v605_v41  ;;  %vm607_vm12 = vcmask (!%p241_p9), 261120   ;;  %s269_s22 = sand.u32 (!%p241_p9), 1, %s2227_s25   ;;  %s2243_s17 = smov (!%p241_p9), [#allocation2]  }
  0x12   : > { %1824 = vmatprep.subr.msk.mxu0 (!%p241_p9), %vm355_vm0, %v329_v8  ;;  %2027 = vmatpush3.bf16.msra.mxu1 (!%p241_p9), %v1966_v15  ;;  %s1695_s23 = sshll.u32 (!%p241_p9), %s269_s22, 6  ;;  %s2177_s18 = sshll.u32 (!%p241_p9), %s2243_s17, 4  ;;  %s2178_s18 = int_to_ptr.vmem [resolvable:$false] %s2177_s18 }
  0x13   : > { %1970 = vmatprep.subr.bf16.mxu1 (!%p241_p9), %v2239_v35  ;;  %s2179_s19 = scalar_lea.vmem (!%p241_p9), %s2178_s18, 2048 }
  0x15   : > { %s273_s13 = scalar_select %p272_p10, %s2307_s28, 1  ;;  %1825 = vmatpush3.msk.msra.mxu0 %vm355_vm0, %v329_v8 }
  0x16   : > { %1967 = vmatprep.subr.bf16.mxu0 %v1966_v15 }
  0x17   : > { %s1745_s14 = sshll.u32 %s273_s13, 6 }
  0x18   : > { %s276_s21 = scalar_lea.vmem %s2628_s0, %s1745_s14 }
  0x19   : > { %v279_v4 = vld [vmem:[%s276_s21 + $0x10] sm:$0xff]  ;;  %v277_v5 = vld [vmem:[%s276_s21] sm:$0xff]  ;;  %v280_v6 = vld [vmem:[%s276_s21 + $0x18] sm:$0xff] }
  0x1a   : > { %294 = vperm.xlu1 %2076, %v279_v4   ;;  %288 = vperm.xlu0 %2075, %v277_v5   ;;  %v278_v7 = vld [vmem:[%s276_s21 + $0x8] sm:$0xff]  ;;  %v281_v10 = vld [vmem:[%s276_s21 + $0x20] sm:$0xff]  ;;  %v284_v11 = vld [vmem:[%s276_s21 + $0x38] sm:$0xff] }
  0x1b   : > { %v282_v9 = vld [vmem:[%s276_s21 + $0x28] sm:$0xff]  ;;  %v283_v12 = vld [vmem:[%s276_s21 + $0x30] sm:$0xff] }
  0x1e   : > { %297 = vperm.xlu1 %2076, %v280_v6   ;;  %291 = vperm.xlu0 %2075, %v278_v7  }
  0x22   : > { %303 = vperm.xlu1 %2076, %v282_v9   ;;  %300 = vperm.xlu0 %2075, %v281_v10  }
  0x26   : > { %309 = vperm.xlu1 %2076, %v284_v11   ;;  %306 = vperm.xlu0 %2075, %v283_v12  }
  0x99   : > { %v295_v18 = vpop.permute.xlu1 %294  ;;  %v289_v19 = vpop.permute.xlu0 %288 }
  0x9a   : > { %vm311_vm2 = vcmp.eq.s32.totalorder %v289_v19, %v286_v17  ;;  %vm313_vm3 = vcmp.eq.s32.totalorder %v295_v18, %v286_v17 }
  0x9b   : > { %v319_v21 = vsel %vm311_vm2, 1.0, %v2238_v20  ;;  %v321_v24 = vsel %vm313_vm3, 1.0, %v2238_v20 }
  0x9c   : > { %1826 = vmatprep.mubr.msk.f32.mxu0 %vm330_vm1, %v319_v21 }
  0x9d   : > { %v298_v22 = vpop.permute.xlu1 %297  ;;  %v292_v23 = vpop.permute.xlu0 %291 }
  0x9e   : > { %vm312_vm4 = vcmp.eq.s32.totalorder %v292_v23, %v286_v17  ;;  %vm314_vm5 = vcmp.eq.s32.totalorder %v298_v22, %v286_v17 }
  0x9f   : > { %v320_v25 = vsel %vm312_vm4, 1.0, %v2238_v20  ;;  %v322_v28 = vsel %vm314_vm5, 1.0, %v2238_v20 }
  0xa0   : > { %1827 = vmatmul.mubr.msk.f32.vlgmr.msra.gmra.mrb[0].mxu0 %vm330_vm1, %v320_v25 }
  0xa1   : > { %v304_v26 = vpop.permute.xlu1 %303  ;;  %1829 = vmatprep.mubr.msk.f32.mxu0 %vm330_vm1, %v321_v24  ;;  %v301_v27 = vpop.permute.xlu0 %300  ;;  %1969 = vmatpush3.bf16.msra.mxu0 %v1966_v15 }
  0xa2   : > { %vm315_vm6 = vcmp.eq.s32.totalorder %v301_v27, %v286_v17  ;;  %vm316_vm7 = vcmp.eq.s32.totalorder %v304_v26, %v286_v17  ;;  %1976 = vmatprep.subr.bf16.mxu0 %v2239_v35 }
  0xa3   : > { %v323_v29 = vsel %vm315_vm6, 1.0, %v2238_v20  ;;  %v324_v32 = vsel %vm316_vm7, 1.0, %v2238_v20 }
  0xa4   : > { %1830 = vmatmul.mubr.msk.f32.gmra.mrb[2].mxu0 %vm330_vm1, %v322_v28 }
  0xa5   : > { %v310_v30 = vpop.permute.xlu1 %309  ;;  %1832 = vmatprep.mubr.msk.f32.mxu0 %vm330_vm1, %v323_v29  ;;  %v307_v31 = vpop.permute.xlu0 %306 }
  0xa6   : > { %vm317_vm8 = vcmp.eq.s32.totalorder %v307_v31, %v286_v17  ;;  %vm318_vm9 = vcmp.eq.s32.totalorder %v310_v30, %v286_v17 }
  0xa7   : > { %v325_v33 = vsel %vm317_vm8, 1.0, %v2238_v20  ;;  %v326_v34 = vsel %vm318_vm9, 1.0, %v2238_v20 }
  0xa8   : > { %1833 = vmatmul.mubr.msk.f32.gmra.mrb[4].mxu0 %vm330_vm1, %v324_v32 }
  0xa9   : > { %1835 = vmatprep.mubr.msk.f32.mxu0 %vm330_vm1, %v325_v33 }
  0xac   : > { %1836 = vmatmul.mubr.msk.f32.gmra.mrb[6].mxu0 %vm330_vm1, %v326_v34 }
 0x173   : > { %v1828_v38 = vpop.f32.mrb[0].mxu0 }
 0x174   : > { %v425_v39 = vpop.f32.mrb[1].mxu0 }
 0x175   : > { %1842 = vmatprep.mubr.msk.f32.mxu0 %vm473_vm10, %v425_v39 }
 0x176   : > { %1843 = vmatmul.mubr.msk.f32.vlgmr.msra.gmra.mrb[8].mxu0 %vm473_vm10, %v1828_v38 }
 0x177   : > { %v1831_v43 = vpop.f32.mrb[2].mxu0  ;;  %1978 = vmatpush3.bf16.msra.mxu0 %v2379_v40 }
 0x178   : > { %v435_v44 = vpop.f32.mrb[3].mxu0  ;;  %1979 = vmatprep.subr.bf16.mxu0 %v2239_v35 }
 0x179   : > { %1845 = vmatprep.mubr.msk.f32.mxu0 %vm473_vm10, %v435_v44 }
 0x17a   : > { %1846 = vmatmul.mubr.msk.f32.gmra.mrb[10].mxu0 %vm473_vm10, %v1831_v43 }
 0x17b   : > { %v1834_v46 = vpop.f32.mrb[4].mxu0  ;;  %1981 = vmatpush3.bf16.msra.mxu0 %v2391_v45  ;;  %1873 = vmatprep.mubr.msk.f32.mxu0 %vm2240_vm11, %v2238_v20 }
 0x17c   : > { %v445_v47 = vpop.f32.mrb[5].mxu0  ;;  %1988 = vmatprep.subr.bf16.mxu0 %v2239_v35 }
 0x17d   : > { %1848 = vmatprep.mubr.msk.f32.mxu1 %vm473_vm10, %v445_v47 }
 0x17e   : > { %1849 = vmatmul.mubr.msk.f32.vlgmr.msra.gmra.mrb[0].mxu1 %vm473_vm10, %v1834_v46 }
 0x17f   : > { %1972 = vmatpush3.bf16.msra.mxu1 %v2379_v40  ;;  %v1837_v48 = vpop.f32.mrb[6].mxu0 }
 0x180   : > { %v455_v49 = vpop.f32.mrb[7].mxu0  ;;  %1973 = vmatprep.subr.bf16.mxu1 %v2239_v35 }
 0x181   : > { %1851 = vmatprep.mubr.msk.f32.mxu1 %vm473_vm10, %v455_v49 }
 0x182   : > { %1852 = vmatmul.mubr.msk.f32.gmra.mrb[2].mxu1 %vm473_vm10, %v1837_v48 }
 0x183   : > { %1975 = vmatpush3.bf16.msra.mxu1 %v2391_v45  ;;  %1862 = vmatprep.mubr.msk.f32.mxu1 %vm2240_vm11, %v2238_v20 }
 0x184   : > { %1982 = vmatprep.subr.bf16.mxu1 %v2239_v35 }
 0x186   : > { %1863 = vmatmul.mubr.f32.vlgmr.msra.gmra.mrb[4].mxu1 %v2238_v20 }
 0x187   : > { %1984 = vmatpush3.bf16.msra.mxu1 %v2379_v40  ;;  %1884 = vmatprep.mubr.msk.f32.mxu1 %vm2240_vm11, %v2238_v20 }
 0x188   : > { %1985 = vmatprep.subr.bf16.mxu1 %v2239_v35 }
 0x18b   : > { %1987 = vmatpush3.bf16.msra.mxu1 %v2391_v45 }
 0x18c   : > { %1994 = vmatprep.subr.bf16.mxu1 %v2239_v35 }
 0x249   : > { %v1844_v51 = vpop.f32.mrb[8].mxu0 }
 0x24a   : > { %v570_v52 = vadd.f32 %v1844_v51, %v1707_v50  ;;  %v564_v53 = vpop.f32.mrb[9].mxu0 }
 0x24b   : > { %v565_v2 = vadd.f32 %v1707_v50, %v564_v53 }
 0x24d   : > { %v1847_v54 = vpop.f32.mrb[10].mxu0 }
 0x24e   : > { %v2418_v55 = vadd.f32 %v1847_v54, %v1707_v50  ;;  %v574_v56 = vpop.f32.mrb[11].mxu0 }
 0x24f   : > { %v2420_v57 = vadd.f32 %v1707_v50, %v574_v56 }
 0x251   : > { %v1850_v58 = vpop.f32.mrb[0].mxu1 }
 0x252   : > { %v2422_v59 = vadd.f32 %v1850_v58, %v1707_v50  ;;  %v584_v60 = vpop.f32.mrb[1].mxu1 }
 0x253   : > { %v2424_v61 = vadd.f32 %v1707_v50, %v584_v60 }
 0x255   : > { %v1853_v62 = vpop.f32.mrb[2].mxu1 }
 0x256   : > { %v2426_v63 = vadd.f32 %v1853_v62, %v1707_v50  ;;  %v594_v0 = vpop.f32.mrb[3].mxu1 }
 0x257   : > { %v2428_v1 = vadd.f32 %v1707_v50, %v594_v0 }
 0x259   : > { %v677_v3 = vpop.f32.mrb[4].mxu1 }
 0x25a   : > { %v681_v4 = vadd.f32 %v677_v3, %v565_v2  ;;  %v1864_v5 = vpop.f32.mrb[5].mxu1 }
 0x25c   : > { %2077 = vtanh.f32 %v681_v4  ;;  %v1716_v7 = vmul.f32 -1.442695, %v681_v4 }
 0x25e   : > { %2079 = vpow2.f32 %v1716_v7 }
 0x266   : > { %v2078_v6 = vpop.eup %2077 }
 0x267   : > { %691 = vrot.lane.b32.xlu0 %v2078_v6, %s2241_s29 }
 0x268   : > { %v2080_v8 = vpop.eup %2079 }
 0x269   : > { %v685_v9 = vadd.f32 1.0, %v2080_v8 }
 0x26b   : > { %2081 = vrcp.f32 %v685_v9 }
 0x275   : > { %v2082_v10 = vpop.eup %2081 }
 0x276   : > { %v689_v13 = vmul.f32 0.0, %v2082_v10 }
 0x2d9   : > { %v692_v11 = vpop.permute.xlu0 %691 }
 0x2da   : > { %v694_v12 = vmul.f32 %v2082_v10, %v692_v11 }
 0x2dc   : > { %696 = vrot.lane.b32.xlu1 %v694_v12, %s2242_s8 }
 0x34e   : > { %v697_v14 = vpop.permute.xlu1 %696 }
 0x34f   : > { %v699_v15 = vadd.f32 %v697_v14, %v689_v13 }
 0x351   : > { %2083 = vtanh.f32 %v699_v15 }
 0x35b   : > { %v2084_v16 = vpop.eup %2083 }
 0x35c   : > { %702 = vrot.lane.b32.xlu0 %v2084_v16, %s2241_s29 }
 0x3ce   : > { %v703_v17 = vpop.permute.xlu0 %702 }
 0x3cf   : > { %v705_v18 = vmul.f32 %v2082_v10, %v703_v17 }
 0x3d1   : > { %707 = vrot.lane.b32.xlu1 %v705_v18, %s2242_s8 }
 0x443   : > { %v2434_v19 = vpop.permute.xlu1 %707 }
 0x444   : > { %1874 = vmatmul.mubr.msk.f32.vlgmr.msra.gmra.mrb[12].mxu0 %vm607_vm12, %v2434_v19 }
 0x445   : > { %1990 = vmatpush3.bf16.msra.mxu0 %v2379_v40  ;;  %1895 = vmatprep.mubr.msk.f32.mxu0 %vm2240_vm11, %v2238_v20 }
 0x446   : > { %1991 = vmatprep.subr.bf16.mxu0 %v2239_v35 }
 0x449   : > { %1993 = vmatpush3.bf16.msra.mxu0 %v2391_v45 }
 0x44a   : > { %2000 = vmatprep.subr.bf16.mxu0 %v2239_v35 }
 0x517   : > { %v777_v21 = vpop.f32.mrb[12].mxu0 }
 0x518   : > { %v781_v22 = vadd.f32 %v777_v21, %v570_v52  ;;  %v1875_v23 = vpop.f32.mrb[13].mxu0 }
 0x51a   : > { %2085 = vtanh.f32 %v781_v22  ;;  %v1718_v25 = vmul.f32 -1.442695, %v781_v22 }
 0x51c   : > { %2087 = vpow2.f32 %v1718_v25 }
 0x524   : > { %v2086_v24 = vpop.eup %2085 }
 0x525   : > { %791 = vrot.lane.b32.xlu0 %v2086_v24, %s2241_s29 }
 0x526   : > { %v2088_v26 = vpop.eup %2087 }
 0x527   : > { %v785_v27 = vadd.f32 1.0, %v2088_v26 }
 0x529   : > { %2089 = vrcp.f32 %v785_v27 }
 0x533   : > { %v2090_v28 = vpop.eup %2089 }
 0x534   : > { %v789_v31 = vmul.f32 %v2090_v28, %v699_v15 }
 0x597   : > { %v792_v29 = vpop.permute.xlu0 %791 }
 0x598   : > { %v794_v30 = vmul.f32 %v2090_v28, %v792_v29 }
 0x59a   : > { %796 = vrot.lane.b32.xlu1 %v794_v30, %s2242_s8 }
 0x60c   : > { %v797_v32 = vpop.permute.xlu1 %796 }
 0x60d   : > { %v799_v33 = vadd.f32 %v797_v32, %v789_v31 }
 0x60f   : > { %2091 = vtanh.f32 %v799_v33 }
 0x619   : > { %v2092_v34 = vpop.eup %2091 }
 0x61a   : > { %802 = vrot.lane.b32.xlu0 %v2092_v34, %s2241_s29 }
 0x68c   : > { %v803_v36 = vpop.permute.xlu0 %802 }
 0x68d   : > { %v805_v37 = vmul.f32 %v2090_v28, %v803_v36 }
 0x68f   : > { %807 = vrot.lane.b32.xlu1 %v805_v37, %s2242_s8 }
 0x701   : > { %v2448_v38 = vpop.permute.xlu1 %807 }
 0x702   : > { %1885 = vmatmul.mubr.msk.f32.vlgmr.msra.gmra.mrb[6].mxu1 %vm607_vm12, %v2448_v38 }
 0x703   : > { %1996 = vmatpush3.bf16.msra.mxu1 %v2379_v40  ;;  %1906 = vmatprep.mubr.msk.f32.mxu1 %vm2240_vm11, %v2238_v20 }
 0x704   : > { %1997 = vmatprep.subr.bf16.mxu1 %v2239_v35 }
 0x707   : > { %1999 = vmatpush3.bf16.msra.mxu1 %v2391_v45 }
 0x708   : > { %2006 = vmatprep.subr.bf16.mxu1 %v2239_v35 }
 0x7d5   : > { %v877_v39 = vpop.f32.mrb[6].mxu1 }
 0x7d6   : > { %v881_v41 = vadd.f32 %v877_v39, %v2420_v57  ;;  %v1886_v42 = vpop.f32.mrb[7].mxu1 }
 0x7d8   : > { %2093 = vtanh.f32 %v881_v41  ;;  %v1720_v44 = vmul.f32 -1.442695, %v881_v41 }
 0x7da   : > { %2095 = vpow2.f32 %v1720_v44 }
 0x7e2   : > { %v2094_v43 = vpop.eup %2093 }
 0x7e3   : > { %891 = vrot.lane.b32.xlu0 %v2094_v43, %s2241_s29 }
 0x7e4   : > { %v2096_v46 = vpop.eup %2095 }
 0x7e5   : > { %v885_v47 = vadd.f32 1.0, %v2096_v46  ;;  %v1407_v46 = vld [vmem:[%s2633_s5 + $0x8] sm:$0xff] }
 0x7e7   : > { %2097 = vrcp.f32 %v885_v47 }
 0x7f1   : > { %v2098_v48 = vpop.eup %2097 }
 0x7f2   : > { %v889_v51 = vmul.f32 %v2098_v48, %v799_v33 }
 0x855   : > { %v892_v49 = vpop.permute.xlu0 %891 }
 0x856   : > { %v894_v50 = vmul.f32 %v2098_v48, %v892_v49 }
 0x858   : > { %896 = vrot.lane.b32.xlu1 %v894_v50, %s2242_s8 }
 0x8ca   : > { %v897_v52 = vpop.permute.xlu1 %896 }
 0x8cb   : > { %v899_v53 = vadd.f32 %v897_v52, %v889_v51  ;;  %v1408_v51 = vld [vmem:[%s2633_s5 + $0x10] sm:$0xff]  ;;  %v1409_v52 = vld [vmem:[%s2633_s5 + $0x18] sm:$0xff] }
 0x8cd   : > { %2099 = vtanh.f32 %v899_v53 }
 0x8d7   : > { %v2100_v54 = vpop.eup %2099 }
 0x8d8   : > { %902 = vrot.lane.b32.xlu0 %v2100_v54, %s2241_s29 }
 0x94a   : > { %v903_v56 = vpop.permute.xlu0 %902 }
 0x94b   : > { %v905_v57 = vmul.f32 %v2098_v48, %v903_v56 }
 0x94d   : > { %907 = vrot.lane.b32.xlu1 %v905_v57, %s2242_s8 }
 0x9bf   : > { %v2463_v58 = vpop.permute.xlu1 %907 }
 0x9c0   : > { %1896 = vmatmul.mubr.msk.f32.vlgmr.msra.gmra.mrb[14].mxu0 %vm607_vm12, %v2463_v58 }
 0x9c1   : > { %2002 = vmatpush3.bf16.msra.mxu0 %v2379_v40  ;;  %1917 = vmatprep.mubr.msk.f32.mxu0 %vm2240_vm11, %v2238_v20 }
 0x9c2   : > { %2003 = vmatprep.subr.bf16.mxu0 %v2239_v35 }
 0x9c5   : > { %2005 = vmatpush3.bf16.msra.mxu0 %v2391_v45 }
 0x9c6   : > { %2012 = vmatprep.subr.bf16.mxu0 %v2239_v35 }
 0xa93   : > { %v977_v60 = vpop.f32.mrb[14].mxu0 }
 0xa94   : > { %v981_v62 = vadd.f32 %v977_v60, %v2418_v55  ;;  %v1897_v0 = vpop.f32.mrb[15].mxu0 }
 0xa96   : > { %2101 = vtanh.f32 %v981_v62  ;;  %v1722_v3 = vmul.f32 -1.442695, %v981_v62 }
 0xa98   : > { %2103 = vpow2.f32 %v1722_v3 }
 0xaa0   : > { %v2102_v2 = vpop.eup %2101 }
 0xaa1   : > { %991 = vrot.lane.b32.xlu0 %v2102_v2, %s2241_s29 }
 0xaa2   : > { %v2104_v4 = vpop.eup %2103 }
 0xaa3   : > { %v985_v5 = vadd.f32 1.0, %v2104_v4 }
 0xaa5   : > { %2105 = vrcp.f32 %v985_v5 }
 0xaaf   : > { %v2106_v6 = vpop.eup %2105 }
 0xab0   : > { %v989_v9 = vmul.f32 %v2106_v6, %v899_v53  ;;  %v2022_v53 = vpack.c.bf16 %v1409_v52, %v1408_v51 }
 0xb13   : > { %v992_v7 = vpop.permute.xlu0 %991 }
 0xb14   : > { %v994_v8 = vmul.f32 %v2106_v6, %v992_v7 }
 0xb16   : > { %996 = vrot.lane.b32.xlu1 %v994_v8, %s2242_s8 }
 0xb88   : > { %v997_v10 = vpop.permute.xlu1 %996 }
 0xb89   : > { %v999_v11 = vadd.f32 %v997_v10, %v989_v9 }
 0xb8b   : > { %2107 = vtanh.f32 %v999_v11 }
 0xb95   : > { %v2108_v55 = vpop.eup %2107 }
 0xb96   : > { %1002 = vrot.lane.b32.xlu0 %v2108_v55, %s2241_s29 }
 0xc08   : > { %v1003_v12 = vpop.permute.xlu0 %1002 }
 0xc09   : > { %v1005_v13 = vmul.f32 %v2106_v6, %v1003_v12 }
 0xc0b   : > { %1007 = vrot.lane.b32.xlu1 %v1005_v13, %s2242_s8 }
 0xc7d   : > { %v2478_v14 = vpop.permute.xlu1 %1007 }
 0xc7e   : > { %1907 = vmatmul.mubr.msk.f32.vlgmr.msra.gmra.mrb[8].mxu1 %vm607_vm12, %v2478_v14 }
 0xc7f   : > { %2008 = vmatpush3.bf16.msra.mxu1 %v2379_v40  ;;  %1928 = vmatprep.mubr.msk.f32.mxu1 %vm2240_vm11, %v2238_v20 }
 0xc80   : > { %2009 = vmatprep.subr.bf16.mxu1 %v2239_v35 }
 0xc83   : > { %2011 = vmatpush3.bf16.msra.mxu1 %v2391_v45 }
 0xd51   : > { %v1077_v15 = vpop.f32.mrb[8].mxu1 }
 0xd52   : > { %v1081_v16 = vadd.f32 %v1077_v15, %v2424_v61  ;;  %v1908_v17 = vpop.f32.mrb[9].mxu1 }
 0xd54   : > { %2109 = vtanh.f32 %v1081_v16  ;;  %v1724_v21 = vmul.f32 -1.442695, %v1081_v16 }
 0xd56   : > { %2111 = vpow2.f32 %v1724_v21 }
 0xd5e   : > { %v2110_v18 = vpop.eup %2109 }
 0xd5f   : > { %1091 = vrot.lane.b32.xlu0 %v2110_v18, %s2241_s29 }
 0xd60   : > { %v2112_v22 = vpop.eup %2111 }
 0xd61   : > { %v1085_v23 = vadd.f32 1.0, %v2112_v22 }
 0xd63   : > { %2113 = vrcp.f32 %v1085_v23 }
 0xd6d   : > { %v2114_v24 = vpop.eup %2113 }
 0xd6e   : > { %v1089_v27 = vmul.f32 %v2114_v24, %v999_v11 }
 0xdd1   : > { %v1092_v25 = vpop.permute.xlu0 %1091 }
 0xdd2   : > { %v1094_v26 = vmul.f32 %v2114_v24, %v1092_v25 }
 0xdd4   : > { %1096 = vrot.lane.b32.xlu1 %v1094_v26, %s2242_s8 }
 0xe46   : > { %v1097_v28 = vpop.permute.xlu1 %1096 }
 0xe47   : > { %v1099_v29 = vadd.f32 %v1097_v28, %v1089_v27 }
 0xe49   : > { %2115 = vtanh.f32 %v1099_v29 }
 0xe53   : > { %v2116_v61 = vpop.eup %2115 }
 0xe54   : > { %1102 = vrot.lane.b32.xlu0 %v2116_v61, %s2241_s29  ;;  %v1731_v61 = vld [vmem:[%s2634_s6] ss:$0 sm:$0xff] }
 0xec6   : > { %v1103_v30 = vpop.permute.xlu0 %1102 }
 0xec7   : > { %v1105_v31 = vmul.f32 %v2114_v24, %v1103_v30 }
 0xec9   : > { %1107 = vrot.lane.b32.xlu1 %v1105_v31, %s2242_s8 }
 0xf3b   : > { %v1108_v32 = vpop.permute.xlu1 %1107 }
 0xf3c   : > { %1918 = vmatmul.mubr.msk.f32.vlgmr.msra.gmra.mrb[16].mxu0 %vm607_vm12, %v1108_v32 }
 0xf3d   : > { %2014 = vmatpush3.bf16.msra.mxu0 %v2379_v40  ;;  %1939 = vmatprep.mubr.msk.f32.mxu0 %vm2240_vm11, %v2238_v20 }
 0xf3e   : > { %2015 = vmatprep.subr.bf16.mxu0 %v2239_v35 }
 0xf41   : > { %2017 = vmatpush3.bf16.msra.mxu0 %v2391_v45 }
0x100f   : > { %v1177_v33 = vpop.f32.mrb[16].mxu0 }
0x1010   : > { %v1181_v34 = vadd.f32 %v1177_v33, %v2422_v59  ;;  %v1919_v36 = vpop.f32.mrb[17].mxu0  ;;  %v1406_v59 = vld [vmem:[%s2633_s5] sm:$0xff] }
0x1011   : > { %v2018_v47 = vpack.c.bf16 %v1407_v46, %v1406_v59 }
0x1012   : > { %2117 = vtanh.f32 %v1181_v34  ;;  %v1726_v39 = vmul.f32 -1.442695, %v1181_v34 }
0x1013   : > { %2019 = vmatprep.subr.bf16.mxu1 %v2018_v47 }
0x1014   : > { %2119 = vpow2.f32 %v1726_v39 }
0x101c   : > { %v2118_v37 = vpop.eup %2117 }
0x101d   : > { %1191 = vrot.lane.b32.xlu0 %v2118_v37, %s2241_s29 }
0x101e   : > { %v2120_v41 = vpop.eup %2119 }
0x101f   : > { %v1185_v42 = vadd.f32 1.0, %v2120_v41 }
0x1021   : > { %2121 = vrcp.f32 %v1185_v42 }
0x102b   : > { %v2122_v40 = vpop.eup %2121 }
0x102c   : > { %v1189_v35 = vmul.f32 %v2122_v40, %v1099_v29 }
0x108f   : > { %v1192_v43 = vpop.permute.xlu0 %1191 }
0x1090   : > { %v1194_v20 = vmul.f32 %v2122_v40, %v1192_v43 }
0x1092   : > { %1196 = vrot.lane.b32.xlu1 %v1194_v20, %s2242_s8 }
0x1104   : > { %v1197_v45 = vpop.permute.xlu1 %1196 }
0x1105   : > { %v1199_v44 = vadd.f32 %v1197_v45, %v1189_v35 }
0x1107   : > { %2123 = vtanh.f32 %v1199_v44 }
0x1111   : > { %v2124_v48 = vpop.eup %2123 }
0x1112   : > { %1202 = vrot.lane.b32.xlu0 %v2124_v48, %s2241_s29 }
0x1184   : > { %v1203_v49 = vpop.permute.xlu0 %1202 }
0x1185   : > { %v1205_v50 = vmul.f32 %v2122_v40, %v1203_v49 }
0x1187   : > { %1207 = vrot.lane.b32.xlu1 %v1205_v50, %s2242_s8 }
0x11f9   : > { %v1208_v54 = vpop.permute.xlu1 %1207 }
0x11fa   : > { %1929 = vmatmul.mubr.msk.f32.vlgmr.msra.gmra.mrb[10].mxu1 %vm607_vm12, %v1208_v54 }
0x11fb   : > { %2021 = vmatpush3.bf16.msra.mxu1 %v2018_v47  ;;  %1950 = vmatprep.mubr.msk.f32.mxu1 %vm607_vm12, %v2434_v19 }
0x11fc   : > { %2023 = vmatprep.subr.bf16.mxu1 %v2022_v53 }
0x11ff   : > { %2025 = vmatpush3.bf16.msra.mxu1 %v2022_v53 }
0x1202   : > { %1951 = vmatmul.mubr.msk.f32.vlgmr.msra.gmra.mrb[12].mxu1 %vm607_vm12, %v2448_v38 }
0x1203   : > { %1953 = vmatprep.mubr.msk.f32.mxu1 %vm607_vm12, %v2463_v58 }
0x1206   : > { %1954 = vmatmul.mubr.msk.f32.gmra.mrb[14].mxu1 %vm607_vm12, %v2478_v14 }
0x1207   : > { %1956 = vmatprep.mubr.msk.f32.mxu1 %vm607_vm12, %v1108_v32 }
0x120a   : > { %1957 = vmatmul.mubr.msk.f32.gmra.mrb[16].mxu1 %vm607_vm12, %v1208_v54 }
0x12cd   : > { %v1277_v56 = vpop.f32.mrb[10].mxu1 }
0x12ce   : > { %v1281_v57 = vadd.f32 %v1277_v56, %v2428_v1  ;;  %v1930_v60 = vpop.f32.mrb[11].mxu1 }
0x12d0   : > { %2125 = vtanh.f32 %v1281_v57  ;;  %v1728_v4 = vmul.f32 -1.442695, %v1281_v57 }
0x12d2   : > { %2127 = vpow2.f32 %v1728_v4 }
0x12d5   : > { %v1952_v19 = vpop.f32.mrb[12].mxu1 }
0x12d6   : > { %v1488_v62 = vpop.f32.mrb[13].mxu1  ;;  %v1494_v37 = vadd.f32 %v1952_v19, %v1731_v61 }
0x12d7   : > { %v1489_v30 = vadd.f32 %v1731_v61, %v1488_v62 }
0x12d9   : > { %v1955_v0 = vpop.f32.mrb[14].mxu1 }
0x12da   : > { %v2126_v2 = vpop.eup %2125  ;;  %v1498_v38 = vpop.f32.mrb[15].mxu1  ;;  %v1504_v32 = vadd.f32 %v1955_v0, %v1731_v61 }
0x12db   : > { %1291 = vrot.lane.b32.xlu0 %v2126_v2, %s2241_s29  ;;  %v1499_v31 = vadd.f32 %v1731_v61, %v1498_v38 }
0x12dc   : > { %v2128_v5 = vpop.eup %2127 }
0x12dd   : > { %v1958_v58 = vpop.f32.mrb[16].mxu1  ;;  %v1285_v6 = vadd.f32 1.0, %v2128_v5 }
0x12de   : > { %v1508_v3 = vpop.f32.mrb[17].mxu1  ;;  %v1514_v33 = vadd.f32 %v1958_v58, %v1731_v61 }
0x12df   : > { %2129 = vrcp.f32 %v1285_v6  ;;  %v1509_v39 = vadd.f32 %v1731_v61, %v1508_v3 }
0x12e9   : > { %v2130_v7 = vpop.eup %2129 }
0x12ea   : > { %v1289_v1 = vmul.f32 %v2130_v7, %v1199_v44 }
0x134d   : > { %v1292_v8 = vpop.permute.xlu0 %1291 }
0x134e   : > { %v1294_v9 = vmul.f32 %v2130_v7, %v1292_v8 }
0x1350   : > { %1296 = vrot.lane.b32.xlu1 %v1294_v9, %s2242_s8 }
0x13c2   : > { %v1297_v10 = vpop.permute.xlu1 %1296 }
0x13c3   : > { %v1299_v11 = vadd.f32 %v1297_v10, %v1289_v1 }
0x13c5   : > { %2131 = vtanh.f32 %v1299_v11 }
0x13cf   : > { %v2132_v55 = vpop.eup %2131 }
0x13d0   : > { %1302 = vrot.lane.b32.xlu0 %v2132_v55, %s2241_s29 }
0x1442   : > { %v1303_v12 = vpop.permute.xlu0 %1302 }
0x1443   : > { %v1305_v13 = vmul.f32 %v2130_v7, %v1303_v12 }
0x1445   : > { %1307 = vrot.lane.b32.xlu1 %v1305_v13, %s2242_s8 }
0x14b7   : > { %v1308_v14 = vpop.permute.xlu1 %1307 }
0x14b8   : > { %1940 = vmatmul.mubr.msk.f32.vlgmr.msra.gmra.mrb[18].mxu0 %vm607_vm12, %v1308_v14  ;;  %1959 = vmatprep.mubr.msk.f32.mxu1 %vm607_vm12, %v1308_v14 }
0x158b   : > { %v1377_v15 = vpop.f32.mrb[18].mxu0 }
0x158c   : > { %v1381_v16 = vadd.f32 %v1377_v15, %v2426_v63  ;;  %v1941_v17 = vpop.f32.mrb[19].mxu0 }
0x158e   : > { %2133 = vtanh.f32 %v1381_v16  ;;  %v1730_v21 = vmul.f32 -1.442695, %v1381_v16 }
0x1590   : > { %2135 = vpow2.f32 %v1730_v21 }
0x1598   : > { %v2134_v18 = vpop.eup %2133 }
0x1599   : > { %1391 = vrot.lane.b32.xlu0 %v2134_v18, %s2241_s29 }
0x159a   : > { %v2136_v22 = vpop.eup %2135 }
0x159b   : > { %v1385_v23 = vadd.f32 1.0, %v2136_v22 }
0x159d   : > { %2137 = vrcp.f32 %v1385_v23 }
0x15a7   : > { %v2138_v24 = vpop.eup %2137 }
0x15a8   : > { %v1389_v27 = vmul.f32 %v2138_v24, %v1299_v11 }
0x160b   : > { %v1392_v25 = vpop.permute.xlu0 %1391 }
0x160c   : > { %v1394_v26 = vmul.f32 %v2138_v24, %v1392_v25 }
0x160e   : > { %1396 = vrot.lane.b32.xlu1 %v1394_v26, %s2242_s8 }
0x1680   : > { %v1397_v28 = vpop.permute.xlu1 %1396 }
0x1681   : > { %v1399_v29 = vadd.f32 %v1397_v28, %v1389_v27 }
0x1683   : > { %2139 = vtanh.f32 %v1399_v29 }
0x168d   : > { %v2140_v63 = vpop.eup %2139 }
0x168e   : > { %1402 = vrot.lane.b32.xlu0 %v2140_v63, %s2241_s29  ;;  %s271_s29 = scalar_lea.vmem [#allocation2], %s1695_s23 }
0x168f   : > { %s1629_s9 = sshll.u32 %s271_s29, 4  ;;  %s2582_s9 = int_to_ptr.vmem [resolvable:$true] %s1629_s9 }
0x1690   : > { %s2173_s16 = scalar_lea.vmem %s2582_s9, 1024  ;;  %p2180_p0 = scmp.lt.s32.totalorder %s2582_s9, %s2178_s18 }
0x1691   : > { %p2174_p11 = scmp.ne.s32.totalorder %s2582_s9, %s2173_s16  ;;  %p2181_p1 = scmp.lt.s32.totalorder %s2179_s19, %s2173_s16 }
0x1693   : > { %p2175_p12 = pnand %p2174_p11, %p2324_p5  ;;  %p2182_p2 = por %p2181_p1, %p2180_p0 }
0x1695   : > { %p2176_p13 = pneg %p2175_p12 }
0x1697   : > { %p2183_p3 = pnand %p2182_p2, %p2176_p13 }
0x16ad   : > { %1527 = vmax.xlane.f32.xlu0 %v1489_v30 }
0x16b1   : > { %1531 = vmax.xlane.f32.xlu0 %v1499_v31 }
0x16b5   : > { %1533 = vmax.xlane.f32.xlu0 %v1504_v32 }
0x16b9   : > { %1537 = vmax.xlane.f32.xlu0 %v1514_v33 }
0x1700   : > { %v1403_v34 = vpop.permute.xlu0 %1402 }
0x1701   : > { %v1405_v36 = vmul.f32 %v2138_v24, %v1403_v34 }
0x1703   : > { %1418 = vrot.lane.b32.xlu1 %v1405_v36, %s2242_s8  ;;  %s1746_s8 = sshll.u32 %s2307_s28, 10  ;;  %s2587_s28 = scalar_lea.sflag [#allocation3], %s269_s22 }
0x1704   : > { %s2580_s15 = scalar_lea.hbm %s2635_s7, %s1746_s8 }
0x1727   : > { %1529 = vmax.xlane.f32.xlu1 %v1494_v37 }
0x172b   : > { %1535 = vmax.xlane.f32.xlu1 %v1509_v39 }
0x173a   : > { %v1528_v42 = vpop.xlane.xlu0 %1527 }
0x173b   : > { %v2544_v45 = vsub.f32 %v1489_v30, %v1528_v42 }
0x173d   : > { %v1551_v46 = vmul.f32 1.442695, %v2544_v45 }
0x173e   : > { %v1532_v40 = vpop.xlane.xlu0 %1531 }
0x173f   : > { %v2550_v47 = vsub.f32 %v1499_v31, %v1532_v40 }
0x1741   : > { %v1555_v52 = vmul.f32 1.442695, %v2550_v47 }
0x1742   : > { %v1534_v20 = vpop.xlane.xlu0 %1533 }
0x1743   : > { %v2546_v44 = vsub.f32 %v1504_v32, %v1534_v20 }
0x1745   : > { %v1557_v50 = vmul.f32 1.442695, %v2546_v44 }
0x1746   : > { %v1538_v48 = vpop.xlane.xlu0 %1537 }
0x1747   : > { %v2553_v51 = vsub.f32 %v1514_v33, %v1538_v48 }
0x1749   : > { %v1561_v54 = vmul.f32 1.442695, %v2553_v51 }
0x1775   : > { %v1419_v41 = vpop.permute.xlu1 %1418 }
0x1776   : > { %1960 = vmatmul.mubr.msk.f32.gmra.mrb[18].mxu1 %vm607_vm12, %v1419_v41 }
0x17b4   : > { %v1530_v43 = vpop.xlane.xlu1 %1529 }
0x17b5   : > { %v2542_v35 = vsub.f32 %v1494_v37, %v1530_v43 }
0x17b7   : > { %v1553_v59 = vmul.f32 1.442695, %v2542_v35 }
0x17b8   : > { %v1536_v49 = vpop.xlane.xlu1 %1535 }
0x17b9   : > { %2141 = vpow2.f32 %v1553_v59  ;;  %v2556_v53 = vsub.f32 %v1509_v39, %v1536_v49 }
0x17ba   : > { %2143 = vpow2.f32 %v1551_v46 }
0x17bb   : > { %2145 = vpow2.f32 %v1557_v50  ;;  %v1559_v57 = vmul.f32 1.442695, %v2556_v53 }
0x17bc   : > { %2147 = vpow2.f32 %v1555_v52 }
0x17bd   : > { %2149 = vpow2.f32 %v1561_v54 }
0x17be   : > { %2151 = vpow2.f32 %v1559_v57 }
0x17c3   : > { %v2142_v0 = vpop.eup %2141 }
0x17c4   : > { %v2144_v2 = vpop.eup %2143 }
0x17c5   : > { %v2146_v38 = vpop.eup %2145 }
0x17c6   : > { %v2148_v58 = vpop.eup %2147 }
0x17c7   : > { %v2150_v3 = vpop.eup %2149 }
0x17c8   : > { %v2152_v4 = vpop.eup %2151 }
0x1849   : > { %v1961_v56 = vpop.f32.mrb[18].mxu1 }
0x184a   : > { %v1524_v60 = vadd.f32 %v1961_v56, %v1731_v61  ;;  %v1518_v19 = vpop.f32.mrb[19].mxu1 }
0x184b   : > { %v1519_v62 = vadd.f32 %v1731_v61, %v1518_v19 }
0x184c   : > { %1541 = vmax.xlane.f32.xlu0 %v1524_v60 }
0x184d   : > { %1539 = vmax.xlane.f32.xlu1 %v1519_v62 }
0x1850   : > { %1569 = vadd.xlane.f32.xlu0 %v2142_v0 }
0x1851   : > { %1567 = vadd.xlane.f32.xlu1 %v2144_v2 }
0x1854   : > { %1573 = vadd.xlane.f32.xlu0 %v2146_v38 }
0x1855   : > { %1571 = vadd.xlane.f32.xlu1 %v2148_v58 }
0x1858   : > { %1577 = vadd.xlane.f32.xlu0 %v2150_v3 }
0x1859   : > { %1575 = vadd.xlane.f32.xlu1 %v2152_v4 }
0x18d9   : > { %v1542_v5 = vpop.xlane.xlu0 %1541 }
0x18da   : > { %v2560_v6 = vsub.f32 %v1524_v60, %v1542_v5  ;;  %v1540_v7 = vpop.xlane.xlu1 %1539 }
0x18db   : > { %v2562_v8 = vsub.f32 %v1519_v62, %v1540_v7 }
0x18dc   : > { %v1565_v9 = vmul.f32 1.442695, %v2560_v6 }
0x18dd   : > { %v1563_v1 = vmul.f32 1.442695, %v2562_v8  ;;  %v1570_v10 = vpop.xlane.xlu0 %1569 }
0x18de   : > { %2153 = vpow2.f32 %v1565_v9  ;;  %v1568_v11 = vpop.xlane.xlu1 %1567 }
0x18df   : > { %2155 = vpow2.f32 %v1563_v1 }
0x18e0   : > { %2157 = vlog2.f32 %v1570_v10 }
0x18e1   : > { %2159 = vlog2.f32 %v1568_v11  ;;  %v1574_v55 = vpop.xlane.xlu0 %1573 }
0x18e2   : > { %2161 = vlog2.f32 %v1574_v55  ;;  %v1572_v12 = vpop.xlane.xlu1 %1571 }
0x18e3   : > { %2163 = vlog2.f32 %v1572_v12 }
0x18e5   : > { %v1578_v13 = vpop.xlane.xlu0 %1577 }
0x18e6   : > { %2165 = vlog2.f32 %v1578_v13  ;;  %v1576_v14 = vpop.xlane.xlu1 %1575 }
0x18e7   : > { %2167 = vlog2.f32 %v1576_v14 }
0x18e8   : > { %v2154_v15 = vpop.eup %2153 }
0x18e9   : > { %v2156_v16 = vpop.eup %2155  ;;  %1581 = vadd.xlane.f32.xlu0 %v2154_v15 }
0x18ea   : > { %v2158_v17 = vpop.eup %2157  ;;  %1579 = vadd.xlane.f32.xlu1 %v2156_v16 }
0x18eb   : > { %v2160_v18 = vpop.eup %2159  ;;  %v1586_v21 = vmul.f32 0.6931472, %v2158_v17 }
0x18ec   : > { %v2162_v22 = vpop.eup %2161  ;;  %v1584_v23 = vmul.f32 0.6931472, %v2160_v18 }
0x18ed   : > { %v2164_v24 = vpop.eup %2163  ;;  %v1600_v25 = vsub.f32 %v2542_v35, %v1586_v21  ;;  %v1590_v26 = vmul.f32 0.6931472, %v2162_v22 }
0x18ee   : > { %v1599_v27 = vsub.f32 %v2544_v45, %v1584_v23  ;;  %v1588_v28 = vmul.f32 0.6931472, %v2164_v24 }
0x18ef   : > { %1608 = vst [vmem:[%s271_s29 + $0x8] sm:$0xff] %v1600_v25  ;;  %v1602_v29 = vsub.f32 %v2546_v44, %v1590_v26 }
0x18f0   : > { %v2166_v63 = vpop.eup %2165  ;;  %1607 = vst [vmem:[%s271_s29] sm:$0xff] %v1599_v27  ;;  %v1601_v61 = vsub.f32 %v2550_v47, %v1588_v28 }
0x18f1   : > { %v2168_v30 = vpop.eup %2167  ;;  %1610 = vst [vmem:[%s271_s29 + $0x18] sm:$0xff] %v1602_v29  ;;  %v1594_v31 = vmul.f32 0.6931472, %v2166_v63 }
0x18f2   : > { %1609 = vst [vmem:[%s271_s29 + $0x10] sm:$0xff] %v1601_v61  ;;  %v1592_v32 = vmul.f32 0.6931472, %v2168_v30 }
0x18f3   : > { %v1604_v33 = vsub.f32 %v2553_v51, %v1594_v31 }
0x18f4   : > { %v1603_v34 = vsub.f32 %v2556_v53, %v1592_v32 }
0x18f5   : > { %1612 = vst [vmem:[%s271_s29 + $0x28] sm:$0xff] %v1604_v33 }
0x18f6   : > { %1611 = vst [vmem:[%s271_s29 + $0x20] sm:$0xff] %v1603_v34 }
0x1976   : > { %v1582_v36 = vpop.xlane.xlu0 %1581 }
0x1977   : > { %2169 = vlog2.f32 %v1582_v36  ;;  %v1580_v37 = vpop.xlane.xlu1 %1579 }
0x1978   : > { %2171 = vlog2.f32 %v1580_v37 }
0x1981   : > { %v2170_v39 = vpop.eup %2169 }
0x1982   : > { %v2172_v41 = vpop.eup %2171  ;;  %v1598_v42 = vmul.f32 0.6931472, %v2170_v39 }
0x1983   : > { %v1596_v40 = vmul.f32 0.6931472, %v2172_v41 }
0x1984   : > { %v1606_v43 = vsub.f32 %v2560_v6, %v1598_v42 }
0x1985   : > { %v1605_v20 = vsub.f32 %v2562_v8, %v1596_v40 }
0x1986   : > { %1614 = vst [vmem:[%s271_s29 + $0x38] sm:$0xff] %v1606_v43 }
0x1987   : > { %1613 = vst [vmem:[%s271_s29 + $0x30] sm:$0xff] %v1605_v20 }
0x1988   : > { %2186 = shalt.err (!%p2183_p3)
}
0x1989   : > { %s2187_s20 = scalar_lea.hbm %s2580_s15, 1024  ;;  %s2191_s23 = scalar_lea.hbm %s2635_s7, 2048 }
0x198a   : > { %p2188_p4 = scmp.ne.s32.totalorder %s2580_s15, %s2187_s20  ;;  %p2192_p9 = scmp.lt.u32.totalorder %s2580_s15, %s2635_s7 }
0x198b   : > { %p2193_p10 = scmp.lt.u32.totalorder %s2191_s23, %s2187_s20  ;;  %p2195_p12 = scmp.lt.u32.totalorder %s2187_s20, %s2580_s15 }
0x198c   : > { %p2189_p7 = pnand %p2188_p4, %p2324_p5 }
0x198d   : > { %p2194_p11 = por %p2193_p10, %p2192_p9 }
0x198e   : > { %p2190_p8 = pneg %p2189_p7 }
0x198f   : > { %p2196_p13 = por %p2195_p12, %p2194_p11 }
0x1991   : > { %p2197_p0 = pnand %p2196_p13, %p2190_p8 }
0x1993   : > { %2200 = shalt.err (!%p2197_p0)
}
0x1994   : > { %s2244_s13 = smov 128   ;;  %s2245_s14 = smov 8  }
0x1995   : > { %2028 = dma.vmem_to_hbm [thread:$0]  (%p2324_p5), %s2582_s9, 1024, %s2580_s15, %s2587_s28, %s2244_s13, %s2244_s13, %s2245_s14  }
0x1996 PF: > { %p2034_p1 = scmp.ge.s32.totalorder %s2235_s27, 2  ;;  %s1644_s16 = sand.u32 1, %s2223_s24  }
0x1997   : > { %s1645_s17 = scalar_lea.sflag [#allocation3], %s1644_s16 }
0x1998   : > { %p2031_p2 = pnand %p2034_p1, %p2328_p6 }
0x199a   : > { %2218 = dma.done.wait (!%p2031_p2), %s1645_s17, 1024  }
0x199b   : > { %2220 = vsyncadd (!%p2031_p2), %s1645_s17, 4294966272  ;;  %p17_p3 = scmp.ge.s32.totalorder %s2311_s30, 4   ;;  %s2638_s24 = smov %s2227_s25 }
0x199c   : > { %s2639_s25 = smov %s2231_s26  ;;  %s2640_s26 = smov %s2322_s10 }
0x199d   : > { %s2641_s27 = smov %s2311_s30  ;;  %19 = sbr.rel (!%p17_p3) target bundleno = 3 (0x3), region = 83 }
0x19a4   :  { %1650 = vsyncpa [#allocation3], 1 }
0x19a5   :  { %1652 = vsyncpa [#allocation3 + $0x1], 1 }

</bundles_post_ra>
